<compile_context>
chip_gen: v7x
topology: tpu7x:2x2x1
jax: 0.10.0
libtpu: 0.0.40
codegen_flags: <defaults>
</compile_context>

<pallas_src>
import functools

import jax
import jax.numpy as jnp
from jax import lax
from jax.experimental import pallas as pl
from jax.experimental.pallas import tpu as pltpu

LANE = 128


# ----------------------------------------------------------------------------
# Kernel
# ----------------------------------------------------------------------------
def _dice_sums_kernel(x_ref, t_ref, int_ref, ysum_ref, zsum_ref, *,
                      apply_softmax, hw, tile_rows, sub, nt, nt_split,
                      might_mask, has_phantom):
    """Accumulates per-class partial sums across the spatial (reduction) axis.

    x_ref:    (C, TR, 128) scores for all classes, one spatial tile (any float)
    t_ref:    (1, TR, 128) class labels (int8/int16/int32), -1 marks padding
    int_ref:  (C, 128) running  sum(score * onehot)          (output accumulator)
    ysum_ref: (C, 128) running  sum(onehot)   (= sum(t*t))   (output accumulator)
    zsum_ref: (C, 128) running  sum(score * score)           (output accumulator)
    """
    s_id = pl.program_id(1)
    i_id = pl.program_id(2)
    i_glob = s_id * nt_split + i_id            # global spatial-tile index

    @pl.when(i_id == 0)
    def _init():
        int_ref[...] = jnp.zeros_like(int_ref)
        ysum_ref[...] = jnp.zeros_like(ysum_ref)
        zsum_ref[...] = jnp.zeros_like(zsum_ref)

    def accumulate(score, tgt, valid):
        """score (C,S,128) f32, tgt (1,S,128) i32, valid (1,S,128) bool | None."""
        if valid is not None:
            tgt = jnp.where(valid, tgt, -1)
            score = jnp.where(valid, score, 0.0)   # also sanitizes NaN/garbage
        if apply_softmax:
            m = jnp.max(score, axis=0, keepdims=True)
            e = jnp.exp(score - m)
            ssum = jnp.sum(e, axis=0, keepdims=True)
            inv = pl.reciprocal(ssum, approx=True)   # EUP slot, not VALU divide
            inv = inv * (2.0 - ssum * inv)           # one Newton step -> ~f32 exact
            score = e * inv
            if valid is not None:
                score = jnp.where(valid, score, 0.0)  # kill 1/C at padded pixels
        classes = lax.broadcasted_iota(jnp.int32, score.shape, 0)
        onehot = (tgt == classes).astype(jnp.float32)
        # TODO(synk): for n_classes >= ~128, route these per-class contractions
        # through the MXU (diag(S @ onehot^T), diag(S @ S^T)); at C=3-4 the VPU
        # is the right unit.
        int_ref[...] += jnp.sum(score * onehot, axis=1)
        ysum_ref[...] += jnp.sum(onehot, axis=1)        # onehot*onehot == onehot
        zsum_ref[...] += jnp.sum(score * score, axis=1)

    def chunk_plain(off, size):
        score = x_ref[:, pl.ds(off, size), :].astype(jnp.float32)
        tgt = t_ref[:, pl.ds(off, size), :].astype(jnp.int32)
        accumulate(score, tgt, None)

    trips = tile_rows // sub
    rem = tile_rows - trips * sub

    def plain_tile():
        if trips == 1:
            chunk_plain(0, sub)
        elif trips > 1:
            @pl.loop(0, trips)
            def _chunks(j):
                chunk_plain(pl.multiple_of(j * sub, sub), sub)
        if rem:
            chunk_plain(trips * sub, rem)

    if not might_mask:
        if has_phantom:
            @pl.when(i_glob < nt)          # skip duplicated (phantom) tiles
            def _valid_tile():
                plain_tile()
        else:
            plain_tile()
        return

    # Masking can only ever be needed on the last real tile; interior tiles
    # (and phantom tiles, which have index >= nt > nt-1) take the cheap path.
    @pl.when(i_glob < nt - 1)
    def _interior_tiles():
        plain_tile()

    @pl.when(i_glob == nt - 1)
    def _last_tile():
        tile_flat0 = (nt - 1) * tile_rows * LANE              # static
        chunks = [(o, sub) for o in range(0, trips * sub, sub)]
        if rem:
            chunks.append((trips * sub, rem))
        full = [(o, sz) for (o, sz) in chunks
                if tile_flat0 + (o + sz) * LANE <= hw]
        strad = [(o, sz) for (o, sz) in chunks
                 if tile_flat0 + o * LANE < hw < tile_flat0 + (o + sz) * LANE]
        # Chunks entirely past hw are statically skipped (contribute nothing).
        n_loop = sum(1 for (_, sz) in full if sz == sub)
        if n_loop == 1:
            chunk_plain(0, sub)
        elif n_loop > 1:
            @pl.loop(0, n_loop)
            def _full_chunks(j):
                chunk_plain(pl.multiple_of(j * sub, sub), sub)
        for (o, sz) in full:
            if sz != sub:                  # fully-valid remainder chunk
                chunk_plain(o, sz)
        for (o, sz) in strad:              # at most one straddling chunk
            score = x_ref[:, pl.ds(o, sz), :].astype(jnp.float32)
            tgt = t_ref[:, pl.ds(o, sz), :].astype(jnp.int32)
            rows = lax.broadcasted_iota(jnp.int32, (1, sz, LANE), 1)
            lanes = lax.broadcasted_iota(jnp.int32, (1, sz, LANE), 2)
            flat = (tile_flat0 + o * LANE) + rows * LANE + lanes
            accumulate(score, tgt, flat < hw)


# ----------------------------------------------------------------------------
# Host-side sizing helpers
# ----------------------------------------------------------------------------
def _vmem_capacity_bytes():
    try:
        info = pltpu.get_tpu_info()
        return int(getattr(info, "vmem_capacity_bytes", 128 << 20))
    except Exception:
        return 128 << 20


def _round_up(v, m):
    return ((v + m - 1) // m) * m


def _round_rows_down(tr):
    if tr >= 512:
        return tr - tr % 512
    return max(32, tr - tr % 32)


def _pick_tile_rows(n_rows, n_classes, x_itemsize, t_itemsize, batch,
                    requested=None):
    """Largest DMA tile whose double-buffered stream footprint fits the budget."""
    vmem_cap = _vmem_capacity_bytes()
    if requested is not None:
        tr = int(requested)
        tr = n_rows if tr >= n_rows else max(8, tr - tr % 8)
        return tr, vmem_cap
    # Generation-aware stream budget (scores + labels, double-buffered).
    budget = (16 << 20) if vmem_cap <= (64 << 20) else (28 << 20)
    bytes_per_row = LANE * (n_classes * x_itemsize + t_itemsize)
    tr = int(budget // (2 * bytes_per_row))
    tr = max(32, min(tr, 8192))
    if tr >= n_rows:
        tr = n_rows
    else:
        tr = _round_rows_down(tr)
        if tr >= n_rows:
            tr = n_rows
    if batch % 2 == 1 and n_rows >= 64 and tr >= n_rows:
        # Guarantee >= 2 spatial tiles so the reduction can be split "parallel"
        # across the two TensorCores of a v7x chip (harmless on 1-TC parts).
        tr = _round_up((n_rows + 1) // 2, 32)
    return tr, vmem_cap


def _pick_sub_rows(tile_rows, n_classes, requested=None):
    """Compute-chunk rows: bounds the ~8 (C, sub, 128) f32 temporaries to ~8 MiB."""
    if requested is not None:
        return max(1, min(int(requested), tile_rows))
    cap = max(8, (8 << 20) // (8 * n_classes * LANE * 4))
    sub = min(512, tile_rows, cap)
    if sub < tile_rows:
        sub = max(8, sub - sub % 8)
    return sub


# ----------------------------------------------------------------------------
# Public wrapper (DiceLoss.forward)
# ----------------------------------------------------------------------------
def dice_loss_pallas(inputs, target, n_classes, weight=None, softmax=False,
                     tile_rows=None, sub_rows=None):
    """DiceLoss.forward. inputs: (B, C, H, W) float; target: (B, H, W) labels."""
    B, C, H, W = inputs.shape
    assert C == n_classes, "predict & target shape do not match"
    HW = H * W

    if n_classes <= 127:
        label_dtype = jnp.int8
    elif n_classes <= 32767:
        label_dtype = jnp.int16
    else:
        label_dtype = jnp.int32

    # Native layout: (B, C, H, W) -> (B, C, NR, 128).  No transpose, no upcast;
    # labels shrink to int8 (float labels truncate toward zero; identical to the
    # reference for integral labels).
    x = inputs.reshape(B, C, HW)
    t = target.reshape(B, 1, HW).astype(label_dtype)
    lane_pad = (-HW) % LANE
    if lane_pad:
        # TODO(synk): this rewrites the full score tensor once in HBM; it could
        # be avoided by computing the <128-column tail outside the kernel.
        x = jnp.pad(x, ((0, 0), (0, 0), (0, lane_pad)))
        t = jnp.pad(t, ((0, 0), (0, 0), (0, lane_pad)), constant_values=-1)
    nr = (HW + lane_pad) // LANE
    x = x.reshape(B, C, nr, LANE)
    t = t.reshape(B, 1, nr, LANE)

    tr, vmem_cap = _pick_tile_rows(nr, C, x.dtype.itemsize, t.dtype.itemsize,
                                   B, tile_rows)
    sub = _pick_sub_rows(tr, C, sub_rows)
    nt = int(pl.cdiv(nr, tr))                        # real spatial tiles
    nsplit = 2 if (B % 2 == 1 and nt >= 2) else 1    # engage 2nd TC when B is odd
    nt_split = int(pl.cdiv(nt, nsplit))
    has_phantom = nsplit * nt_split > nt
    # Masking is only needed for the ragged sublane overhang, or for lane
    # padding under softmax (non-softmax lane pad is exact: score 0, label -1).
    might_mask = (nt * tr > nr) or (lane_pad > 0 and bool(softmax))

    kernel = functools.partial(
        _dice_sums_kernel,
        apply_softmax=bool(softmax), hw=HW, tile_rows=tr, sub=sub, nt=nt,
        nt_split=nt_split, might_mask=might_mask, has_phantom=has_phantom)

    def tile_map(b, s, i):
        # Clamp phantom tiles (odd nt split two ways) back in range; they are
        # skipped in-kernel so the duplicated DMA contributes nothing.
        return (b, 0, jnp.minimum(s * nt_split + i, nt - 1), 0)

    out_spec = pl.BlockSpec((None, None, C, LANE), lambda b, s, i: (b, s, 0, 0))
    out_shape = tuple(
        jax.ShapeDtypeStruct((B, nsplit, C, LANE), jnp.float32)
        for _ in range(3))

    # VMEM: double-buffered streams + bounded compute temporaries + slabs.
    x_block = C * tr * LANE * x.dtype.itemsize
    t_block = tr * LANE * t.dtype.itemsize
    temp_bytes = 8 * C * sub * LANE * 4
    vmem_bytes = (2 * (x_block + t_block) + temp_bytes
                  + 6 * C * LANE * 4 + (2 << 20))
    cap = (48 << 20) if vmem_cap <= (64 << 20) else (100 << 20)
    vmem_limit = int(min(cap, max(32 << 20, vmem_bytes)))

    intersect_p, ysum_p, zsum_p = pl.pallas_call(
        kernel,
        out_shape=out_shape,
        grid_spec=pltpu.PrefetchScalarGridSpec(
            num_scalar_prefetch=0,
            grid=(B, nsplit, nt_split),
            in_specs=[
                pl.BlockSpec((None, C, tr, LANE), tile_map),
                pl.BlockSpec((None, 1, tr, LANE), tile_map),
            ],
            out_specs=[out_spec, out_spec, out_spec],
        ),
        compiler_params=pltpu.CompilerParams(
            dimension_semantics=("parallel", "parallel", "arbitrary"),
            vmem_limit_bytes=vmem_limit),
    )(x, t)

    # Tiny O(B * nsplit * C * 128) combine (glue).
    intersect = jnp.sum(intersect_p, axis=(0, 1, 3))
    y_sum = jnp.sum(ysum_p, axis=(0, 1, 3))
    z_sum = jnp.sum(zsum_p, axis=(0, 1, 3))
    smooth = 1e-10
    per_class_loss = 1.0 - 2.0 * intersect / (z_sum + y_sum + smooth)

    if weight is None:
        weight = jnp.ones((n_classes,), jnp.float32)
    else:
        weight = jnp.asarray(weight, jnp.float32)
    return jnp.sum(per_class_loss * weight) / n_classes


# ----------------------------------------------------------------------------
# Pure-JAX reference (mirror of the PyTorch module) for verification
# ----------------------------------------------------------------------------
def dice_loss_ref(inputs, target, n_classes, weight=None, softmax=False):
    inputs = inputs.astype(jnp.float32)
    if softmax:
        inputs = jax.nn.softmax(inputs, axis=1)
    target_1h = jnp.stack(
        [(target == i) for i in range(n_classes)], axis=1).astype(jnp.float32)
    if weight is None:
        weight = [1] * n_classes
    smooth = 1e-10
    loss = 0.0
    for i in range(n_classes):
        score = inputs[:, i]
        tgt = target_1h[:, i]
        intersect = jnp.sum(score * tgt)
        y_sum = jnp.sum(tgt * tgt)
        z_sum = jnp.sum(score * score)
        dice = 1.0 - 2.0 * intersect / (z_sum + y_sum + smooth)
        loss = loss + dice * weight[i]
    return loss / n_classes


if __name__ == "__main__":
    key = jax.random.PRNGKey(0)
    ks = jax.random.split(key, 10)
    n_classes = 4

    # Case 1: f32 scores, no softmax, lane-aligned (HW=256 -> NR=2), B=2.
    logits1 = jax.random.uniform(ks[0], (2, n_classes, 16, 16), dtype=jnp.float32)
    target1 = jax.random.randint(ks[1], (2, 16, 16), 0, n_classes)
    loss1 = jax.block_until_ready(
        dice_loss_pallas(logits1, target1, n_classes, softmax=False))
    ref1 = dice_loss_ref(logits1, target1, n_classes, softmax=False)
    assert jnp.allclose(loss1, ref1, rtol=1e-5, atol=1e-6), (loss1, ref1)

    # Case 2: bf16 logits ingested natively + in-kernel softmax (HW=1024, NR=8).
    logits2 = jax.random.normal(ks[2], (2, n_classes, 32, 32), dtype=jnp.bfloat16)
    target2 = jax.random.randint(ks[3], (2, 32, 32), 0, n_classes)
    loss2 = jax.block_until_ready(
        dice_loss_pallas(logits2, target2, n_classes, softmax=True))
    ref2 = dice_loss_ref(logits2, target2, n_classes, softmax=True)
    assert jnp.allclose(loss2, ref2, rtol=1e-4, atol=1e-5), (loss2, ref2)

    # Case 3: non-lane-aligned spatial (HW=1600 -> NR=13), float targets,
    # non-uniform class weights, softmax, forced small tile -> multi-step
    # ragged reduction exercising the last-tile masked path.
    nc3 = 3
    logits3 = jax.random.normal(ks[4], (2, nc3, 40, 40), dtype=jnp.float32)
    target3 = jax.random.randint(ks[5], (2, 40, 40), 0, nc3).astype(jnp.float32)
    w3 = [0.2, 0.3, 0.5]
    loss3 = jax.block_until_ready(
        dice_loss_pallas(logits3, target3, nc3, weight=w3, softmax=True,
                         tile_rows=8))
    ref3 = dice_loss_ref(logits3, target3, nc3, weight=w3, softmax=True)
    assert jnp.allclose(loss3, ref3, rtol=1e-4, atol=1e-5), (loss3, ref3)

    # Case 4: B=1 -> spatial reduction split across the second "parallel" grid
    # axis (both TensorCores on v7x); odd tile count exercises the phantom-tile
    # clamp-and-skip path.  (HW=3072, NR=24, tile_rows=8 -> nt=3.)
    logits4 = jax.random.normal(ks[6], (1, n_classes, 48, 64), dtype=jnp.float32)
    target4 = jax.random.randint(ks[7], (1, 48, 64), 0, n_classes)
    loss4 = jax.block_until_ready(
        dice_loss_pallas(logits4, target4, n_classes, softmax=True, tile_rows=8))
    ref4 = dice_loss_ref(logits4, target4, n_classes, softmax=True)
    assert jnp.allclose(loss4, ref4, rtol=1e-4, atol=1e-5), (loss4, ref4)

    # Case 5: B=1 auto split (NR=72 -> two 64-row tiles, last one ragged) with a
    # forced small compute chunk (sub_rows=24) -> multi-trip inner loop plus a
    # remainder chunk and a statically-skipped fully-invalid chunk.
    logits5 = jax.random.normal(ks[8], (1, n_classes, 96, 96), dtype=jnp.float32)
    target5 = jax.random.randint(ks[9], (1, 96, 96), 0, n_classes)
    loss5 = jax.block_until_ready(
        dice_loss_pallas(logits5, target5, n_classes, softmax=True, sub_rows=24))
    ref5 = dice_loss_ref(logits5, target5, n_classes, softmax=True)
    assert jnp.allclose(loss5, ref5, rtol=1e-4, atol=1e-5), (loss5, ref5)

    print("KERNEL_OK")
</pallas_src>

<mosaic_0001>
module attributes {stable_mosaic.version = 11 : i64} {
  func.func @_dice_sums_kernel(%arg0: i32, %arg1: i32, %arg2: i32, %arg3: memref<1x4x2x128xf32, #tpu.memory_space<vmem>>, %arg4: memref<1x1x2x128xi8, #tpu.memory_space<vmem>>, %arg5: memref<1x1x4x128xf32, #tpu.memory_space<vmem>>, %arg6: memref<1x1x4x128xf32, #tpu.memory_space<vmem>>, %arg7: memref<1x1x4x128xf32, #tpu.memory_space<vmem>>) attributes {dimension_semantics = [#tpu.dimension_semantics<parallel>, #tpu.dimension_semantics<parallel>, #tpu.dimension_semantics<arbitrary>], iteration_bounds = array<i64: 2, 1, 1>, scalar_prefetch = 0 : i64, scratch_operands = 0 : i64, tpu.core_type = #tpu.core_type<tc>, window_params = [{transform_indices = @transform_0, window_bounds = array<i64: 1, 4, 2, 128>}, {transform_indices = @transform_1, window_bounds = array<i64: 1, 1, 2, 128>}, {transform_indices = @transform_2, window_bounds = array<i64: 1, 1, 4, 128>}, {transform_indices = @transform_3, window_bounds = array<i64: 1, 1, 4, 128>}, {transform_indices = @transform_4, window_bounds = array<i64: 1, 1, 4, 128>}]} {
    %c0_i32 = arith.constant 0 : i32
    %0 = arith.cmpi eq, %arg2, %c0_i32 : i32
    %1 = arith.extui %0 : i1 to i32
    %c0_i32_0 = arith.constant 0 : i32
    %2 = arith.cmpi ne, %1, %c0_i32_0 : i32
    scf.if %2 {
      %cst_34 = arith.constant 0.000000e+00 : f32
      %36 = vector.broadcast %cst_34 : f32 to vector<4x128xf32>
      %c0_35 = arith.constant 0 : index
      %c0_36 = arith.constant 0 : index
      %c0_37 = arith.constant 0 : index
      %c0_38 = arith.constant 0 : index
      %37 = vector.load %arg5[%c0_35, %c0_36, %c0_37, %c0_38] : memref<1x1x4x128xf32, #tpu.memory_space<vmem>>, vector<1x1x4x128xf32>
      %38 = vector.shape_cast %37 : vector<1x1x4x128xf32> to vector<4x128xf32>
      %39 = vector.shape_cast %36 : vector<4x128xf32> to vector<1x1x4x128xf32>
      tpu.vector_store %arg5[%c0_35, %c0_36, %c0_37, %c0_38], %39 {strides = array<i32>} : memref<1x1x4x128xf32, #tpu.memory_space<vmem>>, vector<1x1x4x128xf32>,
      %cst_39 = arith.constant 0.000000e+00 : f32
      %40 = vector.broadcast %cst_39 : f32 to vector<4x128xf32>
      %c0_40 = arith.constant 0 : index
      %c0_41 = arith.constant 0 : index
      %c0_42 = arith.constant 0 : index
      %c0_43 = arith.constant 0 : index
      %41 = vector.load %arg6[%c0_40, %c0_41, %c0_42, %c0_43] : memref<1x1x4x128xf32, #tpu.memory_space<vmem>>, vector<1x1x4x128xf32>
      %42 = vector.shape_cast %41 : vector<1x1x4x128xf32> to vector<4x128xf32>
      %43 = vector.shape_cast %40 : vector<4x128xf32> to vector<1x1x4x128xf32>
      tpu.vector_store %arg6[%c0_40, %c0_41, %c0_42, %c0_43], %43 {strides = array<i32>} : memref<1x1x4x128xf32, #tpu.memory_space<vmem>>, vector<1x1x4x128xf32>,
      %cst_44 = arith.constant 0.000000e+00 : f32
      %44 = vector.broadcast %cst_44 : f32 to vector<4x128xf32>
      %c0_45 = arith.constant 0 : index
      %c0_46 = arith.constant 0 : index
      %c0_47 = arith.constant 0 : index
      %c0_48 = arith.constant 0 : index
      %45 = vector.load %arg7[%c0_45, %c0_46, %c0_47, %c0_48] : memref<1x1x4x128xf32, #tpu.memory_space<vmem>>, vector<1x1x4x128xf32>
      %46 = vector.shape_cast %45 : vector<1x1x4x128xf32> to vector<4x128xf32>
      %47 = vector.shape_cast %44 : vector<4x128xf32> to vector<1x1x4x128xf32>
      tpu.vector_store %arg7[%c0_45, %c0_46, %c0_47, %c0_48], %47 {strides = array<i32>} : memref<1x1x4x128xf32, #tpu.memory_space<vmem>>, vector<1x1x4x128xf32>,
    } else {
    }
    %c0 = arith.constant 0 : index
    %c0_1 = arith.constant 0 : index
    %c0_2 = arith.constant 0 : index
    %c0_3 = arith.constant 0 : index
    %3 = vector.load %arg3[%c0, %c0_1, %c0_2, %c0_3] : memref<1x4x2x128xf32, #tpu.memory_space<vmem>>, vector<1x4x2x128xf32>
    %4 = vector.shape_cast %3 : vector<1x4x2x128xf32> to vector<4x2x128xf32>
    %c0_4 = arith.constant 0 : index
    %c0_5 = arith.constant 0 : index
    %c0_6 = arith.constant 0 : index
    %c0_7 = arith.constant 0 : index
    %5 = vector.load %arg4[%c0_4, %c0_5, %c0_6, %c0_7] : memref<1x1x2x128xi8, #tpu.memory_space<vmem>>, vector<1x1x2x128xi8>
    %6 = vector.shape_cast %5 : vector<1x1x2x128xi8> to vector<1x2x128xi8>
    %7 = arith.extsi %6 : vector<1x2x128xi8> to vector<1x2x128xi32>
    %8 = tpu.iota {dimensions = array<i32: 0>} : vector<4x2x128xi32>
    %9 = vector.broadcast %7 : vector<1x2x128xi32> to vector<4x2x128xi32>
    %10 = arith.cmpi eq, %9, %8 : vector<4x2x128xi32>
    %11 = arith.extui %10 : vector<4x2x128xi1> to vector<4x2x128xi32>
    %12 = arith.sitofp %11 : vector<4x2x128xi32> to vector<4x2x128xf32>
    %c0_8 = arith.constant 0 : index
    %c0_9 = arith.constant 0 : index
    %c0_10 = arith.constant 0 : index
    %c0_11 = arith.constant 0 : index
    %13 = vector.load %arg5[%c0_8, %c0_9, %c0_10, %c0_11] : memref<1x1x4x128xf32, #tpu.memory_space<vmem>>, vector<1x1x4x128xf32>
    %14 = vector.shape_cast %13 : vector<1x1x4x128xf32> to vector<4x128xf32>
    %15 = arith.mulf %4, %12 : vector<4x2x128xf32>
    %cst = arith.constant dense<0.000000e+00> : vector<4x128xf32>
    %16 = vector.multi_reduction <add>, %15, %cst [1] : vector<4x2x128xf32> to vector<4x128xf32>
    %17 = arith.addf %14, %16 : vector<4x128xf32>
    %c0_12 = arith.constant 0 : index
    %c0_13 = arith.constant 0 : index
    %c0_14 = arith.constant 0 : index
    %c0_15 = arith.constant 0 : index
    %18 = vector.load %arg5[%c0_12, %c0_13, %c0_14, %c0_15] : memref<1x1x4x128xf32, #tpu.memory_space<vmem>>, vector<1x1x4x128xf32>
    %19 = vector.shape_cast %18 : vector<1x1x4x128xf32> to vector<4x128xf32>
    %20 = vector.shape_cast %17 : vector<4x128xf32> to vector<1x1x4x128xf32>
    tpu.vector_store %arg5[%c0_12, %c0_13, %c0_14, %c0_15], %20 {strides = array<i32>} : memref<1x1x4x128xf32, #tpu.memory_space<vmem>>, vector<1x1x4x128xf32>,
    %c0_16 = arith.constant 0 : index
    %c0_17 = arith.constant 0 : index
    %c0_18 = arith.constant 0 : index
    %c0_19 = arith.constant 0 : index
    %21 = vector.load %arg6[%c0_16, %c0_17, %c0_18, %c0_19] : memref<1x1x4x128xf32, #tpu.memory_space<vmem>>, vector<1x1x4x128xf32>
    %22 = vector.shape_cast %21 : vector<1x1x4x128xf32> to vector<4x128xf32>
    %cst_20 = arith.constant dense<0.000000e+00> : vector<4x128xf32>
    %23 = vector.multi_reduction <add>, %12, %cst_20 [1] : vector<4x2x128xf32> to vector<4x128xf32>
    %24 = arith.addf %22, %23 : vector<4x128xf32>
    %c0_21 = arith.constant 0 : index
    %c0_22 = arith.constant 0 : index
    %c0_23 = arith.constant 0 : index
    %c0_24 = arith.constant 0 : index
    %25 = vector.load %arg6[%c0_21, %c0_22, %c0_23, %c0_24] : memref<1x1x4x128xf32, #tpu.memory_space<vmem>>, vector<1x1x4x128xf32>
    %26 = vector.shape_cast %25 : vector<1x1x4x128xf32> to vector<4x128xf32>
    %27 = vector.shape_cast %24 : vector<4x128xf32> to vector<1x1x4x128xf32>
    tpu.vector_store %arg6[%c0_21, %c0_22, %c0_23, %c0_24], %27 {strides = array<i32>} : memref<1x1x4x128xf32, #tpu.memory_space<vmem>>, vector<1x1x4x128xf32>,
    %c0_25 = arith.constant 0 : index
    %c0_26 = arith.constant 0 : index
    %c0_27 = arith.constant 0 : index
    %c0_28 = arith.constant 0 : index
    %28 = vector.load %arg7[%c0_25, %c0_26, %c0_27, %c0_28] : memref<1x1x4x128xf32, #tpu.memory_space<vmem>>, vector<1x1x4x128xf32>
    %29 = vector.shape_cast %28 : vector<1x1x4x128xf32> to vector<4x128xf32>
    %30 = arith.mulf %4, %4 : vector<4x2x128xf32>
    %cst_29 = arith.constant dense<0.000000e+00> : vector<4x128xf32>
    %31 = vector.multi_reduction <add>, %30, %cst_29 [1] : vector<4x2x128xf32> to vector<4x128xf32>
    %32 = arith.addf %29, %31 : vector<4x128xf32>
    %c0_30 = arith.constant 0 : index
    %c0_31 = arith.constant 0 : index
    %c0_32 = arith.constant 0 : index
    %c0_33 = arith.constant 0 : index
    %33 = vector.load %arg7[%c0_30, %c0_31, %c0_32, %c0_33] : memref<1x1x4x128xf32, #tpu.memory_space<vmem>>, vector<1x1x4x128xf32>
    %34 = vector.shape_cast %33 : vector<1x1x4x128xf32> to vector<4x128xf32>
    %35 = vector.shape_cast %32 : vector<4x128xf32> to vector<1x1x4x128xf32>
    tpu.vector_store %arg7[%c0_30, %c0_31, %c0_32, %c0_33], %35 {strides = array<i32>} : memref<1x1x4x128xf32, #tpu.memory_space<vmem>>, vector<1x1x4x128xf32>,
    return
  }
  func.func @transform_0(%arg0: i32, %arg1: i32, %arg2: i32) -> (i32, i32, i32, i32) {
    %c1_i32 = arith.constant 1 : i32
    %0 = arith.muli %arg1, %c1_i32 : i32
    %1 = arith.addi %0, %arg2 : i32
    %c0_i32 = arith.constant 0 : i32
    %2 = arith.minsi %1, %c0_i32 : i32
    %c0_i32_0 = arith.constant 0 : i32
    %c0_i32_1 = arith.constant 0 : i32
    %c0_i32_2 = arith.constant 0 : i32
    return %arg0, %c0_i32_0, %2, %c0_i32_1 : i32, i32, i32, i32
  }
  func.func @transform_1(%arg0: i32, %arg1: i32, %arg2: i32) -> (i32, i32, i32, i32) {
    %c1_i32 = arith.constant 1 : i32
    %0 = arith.muli %arg1, %c1_i32 : i32
    %1 = arith.addi %0, %arg2 : i32
    %c0_i32 = arith.constant 0 : i32
    %2 = arith.minsi %1, %c0_i32 : i32
    %c0_i32_0 = arith.constant 0 : i32
    %c0_i32_1 = arith.constant 0 : i32
    %c0_i32_2 = arith.constant 0 : i32
    return %arg0, %c0_i32_0, %2, %c0_i32_1 : i32, i32, i32, i32
  }
  func.func @transform_2(%arg0: i32, %arg1: i32, %arg2: i32) -> (i32, i32, i32, i32) {
    %c0_i32 = arith.constant 0 : i32
    %c0_i32_0 = arith.constant 0 : i32
    %c0_i32_1 = arith.constant 0 : i32
    return %arg0, %arg1, %c0_i32, %c0_i32_0 : i32, i32, i32, i32
  }
  func.func @transform_3(%arg0: i32, %arg1: i32, %arg2: i32) -> (i32, i32, i32, i32) {
    %c0_i32 = arith.constant 0 : i32
    %c0_i32_0 = arith.constant 0 : i32
    %c0_i32_1 = arith.constant 0 : i32
    return %arg0, %arg1, %c0_i32, %c0_i32_0 : i32, i32, i32, i32
  }
  func.func @transform_4(%arg0: i32, %arg1: i32, %arg2: i32) -> (i32, i32, i32, i32) {
    %c0_i32 = arith.constant 0 : i32
    %c0_i32_0 = arith.constant 0 : i32
    %c0_i32_1 = arith.constant 0 : i32
    return %arg0, %arg1, %c0_i32, %c0_i32_0 : i32, i32, i32, i32
  }
}

</mosaic_0001>

<bundles_post_ra>
// kernel: tpu_custom_call.1
= control target key start
LH: loop header
LB: loop body
LE: loop exit
PB: predicated region body
PF: predicated region fallthrough
CT: control target
= control target key end

     0   :  { %10 = vsyncpa [#allocation3], 0  ;;  %s1296_s0 = inlined_call_operand.hbm [shape: f32[2,4,2,128], index: 0, kind: input, shape index: {}]   ;;  %s1297_s1 = inlined_call_operand.vmem [shape: s8[2,1,2,128], index: 1, kind: input, shape index: {}]   ;;  %s1298_s2 = inlined_call_operand.hbm [shape: f32[2,1,4,128], index: 2, kind: output, shape index: {0}]   ;;  %s1299_s3 = inlined_call_operand.hbm [shape: f32[2,1,4,128], index: 3, kind: output, shape index: {1}]   ;;  %s1300_s4 = inlined_call_operand.hbm [shape: f32[2,1,4,128], index: 4, kind: output, shape index: {2}]  }
   0x1   :  { %12 = vsyncpa [#allocation3 + $0x1], 0 }
   0x2   :  { %13 = vsyncpa [#allocation4], 0 }
   0x3   :  { %15 = vsyncpa [#allocation4 + $0x1], 0 }
   0x4   :  { %16 = vsyncpa [#allocation7], 0 }
   0x5   :  { %18 = vsyncpa [#allocation7 + $0x1], 0  ;;  %s992_s15 = smov 0   ;;  %s994_s16 = smov 0  }
   0x6   :  { %s996_s17 = smov 0   ;;  %s998_s18 = smov 0  }
   0x7   :  { %s1000_s19 = smov 0   ;;  %s1002_s20 = smov 0  }
   0x8 LB: > { %s1023_s21 = sadd.s32 4294967295, %s958_s20   ;;  %s687_s22 = sadd.s32 4294967294, %s958_s20   ;;  %s958_s20 = sphi %s1002_s20, %s24_s20   ;;  %s954_s19 = sphi %s1000_s19, %s1315_s19   ;;  %s950_s18 = sphi %s998_s18, %s1314_s18   ;;  %s946_s17 = sphi %s996_s17, %s1313_s17   ;;  %s942_s16 = sphi %s994_s16, %s1312_s16   ;;  %s938_s15 = sphi %s992_s15, %s1311_s15  }
   0x9   : > { %s43_s23 = sadd.s32 1, %s954_s19  ;;  %s58_s24 = sadd.s32 1, %s946_s17 }
   0xa   : > { %p45_p0 = scmp.ge.s32.totalorder %s43_s23, 2  ;;  %p65_p1 = scmp.ne.s32.totalorder %s946_s17, %s942_s16 }
   0xb   : > { %p66_p2 = scmp.eq.s32.totalorder %s958_s20, 0  ;;  %p71_p3 = scmp.ne.s32.totalorder %s942_s16, %s938_s15 }
   0xc   : > { %s1317_s23 = smov (%p45_p0, %s43_s23), 0  ;;  %p72_p5 = scmp.eq.s32.totalorder %s1023_s21, 0 }
   0xd   : > { %p1035_p4 = por %p66_p2, %p65_p1  ;;  %s53_s26 = ssub.s32 %s954_s19, %s1317_s23 }
   0xe   : > { %p131_p6 = scmp.eq.s32.totalorder %s1023_s21, 1  ;;  %p56_p7 = scmp.eq.s32.totalorder %s53_s26, 0 }
   0xf   : > { %p1043_p8 = por %p72_p5, %p71_p3  ;;  %p137_p10 = scmp.eq.s32.totalorder %s687_s22, 1 }
  0x10   : > { %p1047_p9 = por %p131_p6, %p65_p1  ;;  %p733_p13 = scmp.lt.s32.totalorder %s958_s20, 2 }
  0x11   : > { %s1054_s29 = scalar_select %p56_p7, %s946_s17, %s58_s24  }
  0x12   : > { %s1304_s28 = scalar_select %p1047_p9, 1, 0 }
  0x13   : > { %p1056_p11 = por %p137_p10, %p71_p3  ;;  %s213_s5 = sand.u32 1, %s946_s17  }
  0x14   : > { %s690_s6 = sshll.u32 %s213_s5, 3  ;;  %s710_s7 = sshll.u32 %s954_s19, 7 }
  0x15   : > { %s1305_s30 = scalar_select %p1056_p11, 1, 0 }
  0x16   : > { %s1067_s10 = scalar_lea.hbm %s1296_s0, %s710_s7  ;;  %s217_s11 = scalar_lea.vmem [#allocation2], %s690_s6 }
  0x17   : > { %s228_s12 = sshll.u32 %s217_s11, 4  ;;  %p1073_p0 = pnand %p733_p13, %p1035_p4  ;;  %s1069_s12 = int_to_ptr.vmem [resolvable:$true] %s228_s12 }
  0x18   : > { %s1078_s14 = scalar_lea.sflag [#allocation3], %s213_s5  ;;  %s786_s24 = scalar_lea.hbm %s1067_s10, 128 }
  0x19   : > { %p787_p2 = scmp.ne.s32.totalorder %s1067_s10, %s786_s24  ;;  %p788_p3 = pneg %p1073_p0 }
  0x1a   : > { %s791_s25 = scalar_lea.hbm %s1296_s0, 256  ;;  %p792_p4 = scmp.lt.u32.totalorder %s1067_s10, %s1296_s0 }
  0x1b   : > { %p789_p5 = pnand %p788_p3, %p787_p2  ;;  %p793_p7 = scmp.lt.u32.totalorder %s791_s25, %s786_s24 }
  0x1c   : > { %p795_p13 = scmp.lt.u32.totalorder %s786_s24, %s1067_s10 }
  0x1d   : > { %p790_p6 = pneg %p789_p5  ;;  %p794_p10 = por %p793_p7, %p792_p4 }
  0x1f   : > { %p796_p12 = por %p795_p13, %p794_p10 }
  0x21   : > { %p797_p1 = pnand %p796_p12, %p790_p6 }
  0x23   : > { %800 = shalt.err (!%p797_p1)
}
  0x24   : > { %s801_s5 = scalar_lea.vmem %s1069_s12, 128  ;;  %s960_s9 = smov [#allocation2]  }
  0x25   : > { %p802_p2 = scmp.ne.s32.totalorder %s1069_s12, %s801_s5  ;;  %s806_s11 = sshll.u32 %s960_s9, 4  ;;  %s807_s11 = int_to_ptr.vmem [resolvable:$false] %s806_s11 }
  0x26   : > { %s808_s26 = scalar_lea.vmem %s807_s11, 256  ;;  %p809_p9 = scmp.lt.s32.totalorder %s1069_s12, %s807_s11 }
  0x27   : > { %p804_p5 = pnand %p802_p2, %p788_p3  ;;  %p810_p4 = scmp.lt.s32.totalorder %s808_s26, %s801_s5 }
  0x29   : > { %p805_p11 = pneg %p804_p5  ;;  %p811_p7 = por %p810_p4, %p809_p9 }
  0x2b   : > { %p812_p10 = pnand %p811_p7, %p805_p11 }
  0x2d   : > { %815 = shalt.err (!%p812_p10)
}
  0x2e   : > { %s961_s24 = smov 32   ;;  %s962_s6 = smov 2  }
  0x2f   : > { %722 = dma.hbm_to_vmem [thread:$0]  (!%p1073_p0), %s1067_s10, 128, %s1069_s12, %s1078_s14, %s961_s24, %s961_s24, %s962_s6  }
  0x30   : > { %p251_p12 = scmp.lt.s32.totalorder %s958_s20, 3  ;;  %p1307_p1 = scmp.ge.s32.totalorder %s958_s20, 1 }
  0x32   : > { %p252_p3 = pnand %p1307_p1, %p251_p12 }
  0x33   : > { %s1110_s25 = sand.u32 (!%p252_p3), 1, %s942_s16  }
  0x34   : > { %255 = sbr.rel (%p252_p3) target bundleno = 157 (0x9d), region = 28  ;;  %s694_s7 = sshll.u32 (!%p252_p3), %s1110_s25, 3 }
  0x35   : > { %s258_s8 = scalar_lea.sflag (!%p252_p3), [#allocation3], %s1110_s25  ;;  %s261_s5 = scalar_lea.vmem (!%p252_p3), [#allocation2], %s694_s7 }
  0x3b   : > { %925 = dma.done.wait (%p1043_p8), %s258_s8, 128  }
  0x3c   : > { %927 = vsyncadd (%p1043_p8), %s258_s8, 4294967168  ;;  %s695_s10 = sshll.u32 %s1110_s25, 2  ;;  %p311_p9 = scmp.lt.s32.totalorder %s950_s18, 1  ;;  %v963_v0 = vmov 0.0   ;;  %vm350_vm0 = vcmask 1041408   ;;  %vm383_vm5 = vcmask 1041409  }
  0x3d   : > { %s1120_s12 = scalar_lea.vmem [#allocation6], %s695_s10  ;;  %s1123_s13 = scalar_lea.vmem [#allocation5], %s695_s10  ;;  %v327_v1 = vld [vmem:[%s261_s5] sm:$0x3]  ;;  %v328_v2 = vld [vmem:[%s261_s5 + $0x2] sm:$0x3] }
  0x3e   : > { %325 = vst [vmem:[%s1120_s12] sm:$0xf] %v963_v0  ;;  %324 = vst [vmem:[%s1123_s13] sm:$0xf] %v963_v0  ;;  %s1126_s14 = scalar_lea.vmem [#allocation8], %s695_s10  ;;  %v329_v3 = vld [vmem:[%s261_s5 + $0x4] sm:$0x3]  ;;  %v432_v6 = vmul.f32 %v327_v1, %v327_v1  ;;  %v433_v7 = vmul.f32 %v328_v2, %v328_v2  ;;  %vm385_vm6 = vcmask 1042434  }
  0x3f   : > { %326 = vst [vmem:[%s1126_s14] sm:$0xf] %v963_v0  ;;  %s312_s27 = scalar_select %p311_p9, %s950_s18, 1  ;;  %v330_v5 = vld [vmem:[%s261_s5 + $0x6] sm:$0x3]  ;;  %v434_v8 = vmul.f32 %v329_v3, %v329_v3  ;;  %vm387_vm7 = vcmask 1043459  }
  0x40   : > { %v1133_v10 = vmul.f32 %v330_v5, %v330_v5  ;;  %v1136_v11 = vsel %vm350_vm0, %v432_v6, 0.0  ;;  %v1139_v12 = vsel %vm350_vm0, %v433_v7, 0.0  ;;  %s479_s24 = sand.u32 1, %s1023_s21   ;;  %s1154_s6 = sshll.u32 %s950_s18, 6 }
  0x41   : > { %s316_s26 = scalar_lea.vmem %s1297_s1, %s312_s27  ;;  %v1142_v13 = vsel %vm350_vm0, %v434_v8, 0.0  ;;  %v437_v8 = vrot.slane %v1136_v11, 4  ;;  %s513_s7 = sshll.u32 %s1120_s12, 4  ;;  %s1172_s7 = int_to_ptr.vmem [resolvable:$true] %s513_s7 }
  0x42   : > { %v331_v4 = vld [vmem:[%s316_s26] sm:$0x1]  ;;  %s1170_s5 = scalar_lea.hbm %s1299_s3, %s1154_s6  ;;  %s499_s10 = sshll.u32 %s1123_s13, 4  ;;  %s1217_s10 = int_to_ptr.vmem [resolvable:$true] %s499_s10 }
  0x43   : > { %v332_v9 = vunpack.c.0.s8 %v331_v4  ;;  %s1184_s27 = scalar_lea.sflag [#allocation7], %s479_s24  ;;  %s816_s9 = scalar_lea.vmem %s1172_s7, 64 }
  0x44   : > { %p817_p8 = scmp.ne.s32.totalorder %s1172_s7, %s816_s9  ;;  %p1308_p11 = scmp.ne.s32.totalorder %s1304_s28, 0 }
  0x45   : > { %vm333_vm1 = vcmp.eq.s32.totalorder %v332_v9, 0  ;;  %vm334_vm2 = vcmp.eq.s32.totalorder %v332_v9, 1  ;;  %vm335_vm3 = vcmp.eq.s32.totalorder %v332_v9, 2  ;;  %vm336_vm4 = vcmp.eq.s32.totalorder %v332_v9, 3  ;;  %v392_v6 = vld [vmem:[%s1120_s12] sm:$0xf] }
  0x46   : > { %v698_v14 = vsel %vm333_vm1, 1.0, %v963_v0  ;;  %v699_v15 = vsel %vm334_vm2, 1.0, %v963_v0  ;;  %v700_v16 = vsel %vm335_vm3, 1.0, %v963_v0  ;;  %v701_v17 = vsel %vm336_vm4, 1.0, %v963_v0  ;;  %p818_p0 = pnand %p817_p8, %p1308_p11 }
  0x47   : > { %v393_v18 = vsel %vm350_vm0, %v698_v14, 0.0  ;;  %v400_v19 = vsel %vm350_vm0, %v699_v15, 0.0  ;;  %v407_v20 = vsel %vm350_vm0, %v700_v16, 0.0  ;;  %v414_v21 = vsel %vm350_vm0, %v701_v17, 0.0 }
  0x48   : > { %v394_v22 = vrot.slane %v393_v18, 4  ;;  %v401_v23 = vrot.slane %v400_v19, 4  ;;  %v408_v24 = vrot.slane %v407_v20, 4  ;;  %v415_v25 = vrot.slane %v414_v21, 4  ;;  %p819_p6 = pneg %p818_p0 }
  0x49   : > { %v346_v26 = vmul.f32 %v698_v14, %v327_v1  ;;  %v347_v27 = vmul.f32 %v699_v15, %v328_v2  ;;  %v348_v28 = vmul.f32 %v700_v16, %v329_v3  ;;  %v349_v29 = vmul.f32 %v701_v17, %v330_v5 }
  0x4a   : > { %v395_v30 = vadd.f32 %v394_v22, %v393_v18  ;;  %v402_v31 = vadd.f32 %v401_v23, %v400_v19  ;;  %v409_v32 = vadd.f32 %v408_v24, %v407_v20  ;;  %v416_v33 = vadd.f32 %v415_v25, %v414_v21 }
  0x4b   : > { %v351_v34 = vsel %vm350_vm0, %v346_v26, 0.0  ;;  %v358_v35 = vsel %vm350_vm0, %v347_v27, 0.0  ;;  %v365_v36 = vsel %vm350_vm0, %v348_v28, 0.0  ;;  %v372_v37 = vsel %vm350_vm0, %v349_v29, 0.0  ;;  %v345_v29 = vld [vmem:[%s1123_s13] sm:$0xf] }
  0x4c   : > { %v396_v38 = vrot.slane %v395_v30, 2  ;;  %v403_v39 = vrot.slane %v402_v31, 2  ;;  %v410_v40 = vrot.slane %v409_v32, 2  ;;  %v417_v41 = vrot.slane %v416_v33, 2 }
  0x4d   : > { %v352_v42 = vrot.slane %v351_v34, 4  ;;  %v359_v43 = vrot.slane %v358_v35, 4  ;;  %v366_v44 = vrot.slane %v365_v36, 4  ;;  %v373_v45 = vrot.slane %v372_v37, 4 }
  0x4e   : > { %v397_v46 = vadd.f32 %v396_v38, %v395_v30  ;;  %v404_v47 = vadd.f32 %v403_v39, %v402_v31  ;;  %v411_v48 = vadd.f32 %v410_v40, %v409_v32  ;;  %v418_v49 = vadd.f32 %v417_v41, %v416_v33 }
  0x4f   : > { %v353_v50 = vadd.f32 %v352_v42, %v351_v34  ;;  %v360_v51 = vadd.f32 %v359_v43, %v358_v35  ;;  %v367_v52 = vadd.f32 %v366_v44, %v365_v36  ;;  %v374_v53 = vadd.f32 %v373_v45, %v372_v37 }
  0x50   : > { %v398_v54 = vrot.slane %v397_v46, 1  ;;  %v405_v55 = vrot.slane %v404_v47, 1  ;;  %v412_v56 = vrot.slane %v411_v48, 1  ;;  %v419_v57 = vrot.slane %v418_v49, 1 }
  0x51   : > { %v354_v58 = vrot.slane %v353_v50, 2  ;;  %v361_v59 = vrot.slane %v360_v51, 2  ;;  %v368_v60 = vrot.slane %v367_v52, 2  ;;  %v375_v61 = vrot.slane %v374_v53, 2 }
  0x52   : > { %v399_v62 = vadd.f32 %v398_v54, %v397_v46  ;;  %v406_v63 = vadd.f32 %v405_v55, %v404_v47  ;;  %v413_v0 = vadd.f32 %v412_v56, %v411_v48  ;;  %v420_v1 = vadd.f32 %v419_v57, %v418_v49 }
  0x53   : > { %v355_v2 = vadd.f32 %v354_v58, %v353_v50  ;;  %v362_v3 = vadd.f32 %v361_v59, %v360_v51  ;;  %v369_v4 = vadd.f32 %v368_v60, %v367_v52  ;;  %v376_v5 = vadd.f32 %v375_v61, %v374_v53 }
  0x54   : > { %v425_v7 = vsel %vm383_vm5, %v406_v63, %v399_v62  ;;  %v444_v9 = vrot.slane %v1139_v12, 4  ;;  %v451_v14 = vrot.slane %v1142_v13, 4  ;;  %v438_v21 = vadd.f32 %v437_v8, %v1136_v11 }
  0x55   : > { %v426_v15 = vsel %vm385_vm6, %v413_v0, %v425_v7  ;;  %v356_v16 = vrot.slane %v355_v2, 1  ;;  %v363_v17 = vrot.slane %v362_v3, 1  ;;  %v370_v18 = vrot.slane %v369_v4, 1 }
  0x56   : > { %v427_v19 = vsel %vm387_vm7, %v420_v1, %v426_v15  ;;  %v377_v20 = vrot.slane %v376_v5, 1  ;;  %v445_v22 = vadd.f32 %v444_v9, %v1139_v12  ;;  %v439_v11 = vrot.slane %v438_v21, 2 }
  0x57   : > { %v429_v23 = vadd.f32 %v427_v19, %v392_v6  ;;  %v357_v24 = vadd.f32 %v356_v16, %v355_v2  ;;  %v364_v25 = vadd.f32 %v363_v17, %v362_v3  ;;  %v371_v26 = vadd.f32 %v370_v18, %v369_v4 }
  0x58   : > { %v378_v27 = vadd.f32 %v377_v20, %v376_v5  ;;  %v446_v28 = vrot.slane %v445_v22, 2  ;;  %v452_v12 = vadd.f32 %v451_v14, %v1142_v13  ;;  %v457_v31 = vsel %vm350_vm0, %v1133_v10, 0.0 }
  0x59   : > { %430 = vst [vmem:[%s1120_s12] sm:$0xf] %v429_v23  ;;  %v384_v30 = vsel %vm383_vm5, %v364_v25, %v357_v24  ;;  %v440_v33 = vadd.f32 %v439_v11, %v438_v21  ;;  %s964_s12 = smov [#allocation6]  }
  0x5a   : > { %v386_v32 = vsel %vm385_vm6, %v371_v26, %v384_v30  ;;  %v447_v34 = vadd.f32 %v446_v28, %v445_v22  ;;  %v453_v35 = vrot.slane %v452_v12, 2  ;;  %s820_s11 = sshll.u32 %s964_s12, 4  ;;  %s821_s11 = int_to_ptr.vmem [resolvable:$false] %s820_s11 }
  0x5b   : > { %s822_s26 = scalar_lea.vmem %s821_s11, 128  ;;  %p823_p13 = scmp.lt.s32.totalorder %s1172_s7, %s821_s11 }
  0x5c   : > { %p824_p2 = scmp.lt.s32.totalorder %s822_s26, %s816_s9 }
  0x5e   : > { %p825_p5 = por %p824_p2, %p823_p13 }
  0x60   : > { %p826_p4 = pnand %p825_p5, %p819_p6 }
  0x62   : > { %829 = shalt.err (!%p826_p4)
}
  0x63   : > { %s830_s21 = scalar_lea.hbm %s1170_s5, 64  ;;  %s834_s8 = scalar_lea.hbm %s1299_s3, 128 }
  0x64   : > { %p831_p7 = scmp.ne.s32.totalorder %s1170_s5, %s830_s21  ;;  %p835_p1 = scmp.lt.u32.totalorder %s1170_s5, %s1299_s3 }
  0x65   : > { %p836_p3 = scmp.lt.u32.totalorder %s834_s8, %s830_s21  ;;  %p838_p8 = scmp.lt.u32.totalorder %s830_s21, %s1170_s5 }
  0x66   : > { %p832_p10 = pnand %p831_p7, %p1308_p11 }
  0x67   : > { %p837_p9 = por %p836_p3, %p835_p1 }
  0x68   : > { %p833_p12 = pneg %p832_p10 }
  0x69   : > { %p839_p0 = por %p838_p8, %p837_p9 }
  0x6b   : > { %p840_p6 = pnand %p839_p0, %p833_p12 }
  0x6d   : > { %843 = shalt.err (!%p840_p6)
}
  0x6e   : > { %714 = dma.vmem_to_hbm [thread:$0]  (%p1308_p11), %s1172_s7, 64, %s1170_s5, %s1184_s27   ;;  %v388_v10 = vsel %vm387_vm7, %v378_v27, %v386_v32  ;;  %v458_v13 = vrot.slane %v457_v31, 4  ;;  %v441_v37 = vrot.slane %v440_v33, 1  ;;  %v448_v38 = vrot.slane %v447_v34, 1 }
  0x6f   : > { %v390_v36 = vadd.f32 %v388_v10, %v345_v29  ;;  %v454_v39 = vadd.f32 %v453_v35, %v452_v12  ;;  %s1213_s21 = scalar_lea.hbm %s1298_s2, %s1154_s6  ;;  %s475_s7 = scalar_lea.sflag [#allocation4], %s1110_s25 }
  0x70   : > { %v459_v40 = vadd.f32 %v458_v13, %v457_v31  ;;  %v442_v41 = vadd.f32 %v441_v37, %v440_v33  ;;  %v449_v42 = vadd.f32 %v448_v38, %v447_v34  ;;  %s844_s5 = scalar_lea.vmem %s1217_s10, 64  ;;  %s965_s24 = smov [#allocation5]  }
  0x71   : > { %391 = vst [vmem:[%s1123_s13] sm:$0xf] %v390_v36  ;;  %v455_v43 = vrot.slane %v454_v39, 1  ;;  %p845_p13 = scmp.ne.s32.totalorder %s1217_s10, %s844_s5  ;;  %s848_s18 = sshll.u32 %s965_s24, 4  ;;  %s849_s18 = int_to_ptr.vmem [resolvable:$false] %s848_s18 }
  0x72   : > { %v460_v44 = vrot.slane %v459_v40, 2  ;;  %s850_s8 = scalar_lea.vmem %s849_s18, 128  ;;  %p851_p4 = scmp.lt.s32.totalorder %s1217_s10, %s849_s18 }
  0x73   : > { %p846_p2 = pnand %p845_p13, %p1308_p11  ;;  %p852_p7 = scmp.lt.s32.totalorder %s850_s8, %s844_s5 }
  0x75   : > { %p847_p5 = pneg %p846_p2  ;;  %p853_p10 = por %p852_p7, %p851_p4 }
  0x77   : > { %p854_p12 = pnand %p853_p10, %p847_p5 }
  0x79   : > { %857 = shalt.err (!%p854_p12)
}
  0x7a   : > { %s858_s25 = scalar_lea.hbm %s1213_s21, 64  ;;  %s862_s11 = scalar_lea.hbm %s1298_s2, 128 }
  0x7b   : > { %p859_p1 = scmp.ne.s32.totalorder %s1213_s21, %s858_s25  ;;  %p863_p8 = scmp.lt.u32.totalorder %s1213_s21, %s1298_s2 }
  0x7c   : > { %p864_p0 = scmp.lt.u32.totalorder %s862_s11, %s858_s25  ;;  %p866_p13 = scmp.lt.u32.totalorder %s858_s25, %s1213_s21 }
  0x7d   : > { %p860_p3 = pnand %p859_p1, %p1308_p11 }
  0x7e   : > { %p865_p6 = por %p864_p0, %p863_p8 }
  0x7f   : > { %p861_p9 = pneg %p860_p3 }
  0x80   : > { %p867_p2 = por %p866_p13, %p865_p6 }
  0x82   : > { %p868_p5 = pnand %p867_p2, %p861_p9 }
  0x84   : > { %871 = shalt.err (!%p868_p5)
}
  0x85   : > { %713 = dma.vmem_to_hbm [thread:$0]  (%p1308_p11), %s1217_s10, 64, %s1213_s21, %s475_s7   ;;  %v456_v45 = vadd.f32 %v455_v43, %v454_v39  ;;  %v461_v46 = vadd.f32 %v460_v44, %v459_v40  ;;  %v468_v47 = vsel %vm383_vm5, %v449_v42, %v442_v41  ;;  %v431_v50 = vld [vmem:[%s1126_s14] sm:$0xf] }
  0x86   : > { %s527_s5 = sshll.u32 %s1126_s14, 4  ;;  %s525_s7 = scalar_lea.hbm %s1300_s4, %s1154_s6  ;;  %s1247_s5 = int_to_ptr.vmem [resolvable:$true] %s527_s5 }
  0x87   : > { %v462_v48 = vrot.slane %v461_v46, 1  ;;  %v469_v49 = vsel %vm385_vm6, %v456_v45, %v468_v47  ;;  %s872_s24 = scalar_lea.vmem %s1247_s5, 64  ;;  %s966_s18 = smov [#allocation8]  }
  0x88   : > { %p873_p4 = scmp.ne.s32.totalorder %s1247_s5, %s872_s24  ;;  %s876_s8 = sshll.u32 %s966_s18, 4  ;;  %s877_s8 = int_to_ptr.vmem [resolvable:$false] %s876_s8 }
  0x89   : > { %v463_v51 = vadd.f32 %v462_v48, %v461_v46  ;;  %s878_s25 = scalar_lea.vmem %s877_s8, 128  ;;  %p879_p12 = scmp.lt.s32.totalorder %s1247_s5, %s877_s8 }
  0x8a   : > { %p874_p7 = pnand %p873_p4, %p1308_p11  ;;  %p880_p1 = scmp.lt.s32.totalorder %s878_s25, %s872_s24 }
  0x8b   : > { %v470_v52 = vsel %vm387_vm7, %v463_v51, %v469_v49 }
  0x8c   : > { %v472_v53 = vadd.f32 %v470_v52, %v431_v50  ;;  %p875_p10 = pneg %p874_p7  ;;  %p881_p3 = por %p880_p1, %p879_p12 }
  0x8e   : > { %473 = vst [vmem:[%s1126_s14] sm:$0xf] %v472_v53  ;;  %p882_p9 = pnand %p881_p3, %p875_p10 }
  0x90   : > { %885 = shalt.err (!%p882_p9)
}
  0x91   : > { %s886_s13 = scalar_lea.hbm %s525_s7, 64  ;;  %s890_s12 = scalar_lea.hbm %s1300_s4, 128 }
  0x92   : > { %p887_p8 = scmp.ne.s32.totalorder %s525_s7, %s886_s13  ;;  %p891_p13 = scmp.lt.u32.totalorder %s525_s7, %s1300_s4 }
  0x93   : > { %p892_p2 = scmp.lt.u32.totalorder %s890_s12, %s886_s13  ;;  %p894_p4 = scmp.lt.u32.totalorder %s886_s13, %s525_s7 }
  0x94   : > { %p888_p0 = pnand %p887_p8, %p1308_p11 }
  0x95   : > { %p893_p5 = por %p892_p2, %p891_p13 }
  0x96   : > { %p889_p6 = pneg %p888_p0 }
  0x97   : > { %p895_p7 = por %p894_p4, %p893_p5 }
  0x99   : > { %p896_p10 = pnand %p895_p7, %p889_p6 }
  0x9b   : > { %899 = shalt.err (!%p896_p10)
}
  0x9c   : > { %715 = dma.vmem_to_hbm [thread:$0]  (%p1308_p11), %s1247_s5, 64, %s525_s7, %s1184_s27  }
  0x9d PF: > { %s539_s26 = sand.u32 1, %s938_s15   ;;  %p1309_p12 = scmp.ne.s32.totalorder %s1305_s30, 0 }
  0x9e   : > { %p1310_p1 = scmp.ge.s32.totalorder %s958_s20, 2  ;;  %s540_s10 = scalar_lea.sflag [#allocation4], %s539_s26 }
  0xa0   : > { %p724_p3 = pnand %p1310_p1, %p1309_p12 }
  0xa2   : > { %929 = dma.done.wait (!%p724_p3), %s540_s10, 64  }
  0xa3   : > { %931 = vsyncadd (!%p724_p3), %s540_s10, 4294967232  ;;  %s548_s21 = sand.u32 1, %s687_s22  }
  0xa4   : > { %s549_s24 = scalar_lea.sflag [#allocation7], %s548_s21 }
  0xa5   : > { %933 = dma.done.wait (!%p724_p3), %s549_s24, 128  }
  0xa6   : > { %935 = vsyncadd (!%p724_p3), %s549_s24, 4294967168  ;;  %s24_s20 = sadd.s32 1, %s958_s20   ;;  %s1311_s15 = smov %s942_s16 }
  0xa7   : > { %p21_p11 = scmp.ge.s32.totalorder %s24_s20, 4   ;;  %s1312_s16 = smov %s946_s17 }
  0xa8   : > { %s1313_s17 = smov %s1054_s29  ;;  %s1314_s18 = smov %s954_s19 }
  0xa9   : > { %s1315_s19 = smov %s1317_s23  ;;  %23 = sbr.rel (!%p21_p11) target bundleno = 8 (0x8), region = 112 }
  0xb0   :  { %563 = vsyncpa [#allocation3], 1 }
  0xb1   :  { %565 = vsyncpa [#allocation3 + $0x1], 1 }
  0xb2   :  { %566 = vsyncpa [#allocation4], 1 }
  0xb3   :  { %568 = vsyncpa [#allocation4 + $0x1], 1 }
  0xb4   :  { %569 = vsyncpa [#allocation7], 1 }
  0xb5   :  { %571 = vsyncpa [#allocation7 + $0x1], 1 }

</bundles_post_ra>
